<compile_context>
chip_gen: v7x
topology: tpu7x:2x2x1
jax: 0.10.0
libtpu: 0.0.40
codegen_flags: <defaults>
</compile_context>

<pallas_src>
import math
from functools import partial

import jax
import jax.numpy as jnp
from jax.experimental import pallas as pl
from jax.experimental.pallas import tpu as pltpu

IN_FEATS = 28 * 28        # 784
LATENT = 3

_LAYER_DIMS = [
    (IN_FEATS, 128), (128, 64), (64, 12), (12, LATENT),   # encoder
    (LATENT, 12), (12, 64), (64, 128), (128, IN_FEATS),   # decoder
]


def _round_up(n, m):
    return ((n + m - 1) // m) * m


def _cdiv(a, b):
    return (a + b - 1) // b


def _autoencoder_kernel(
    x_ref,
    w1_ref, b1_ref, w2_ref, b2_ref, w3_ref, b3_ref, w4_ref, b4_ref,   # encoder
    w5_ref, b5_ref, w6_ref, b6_ref, w7_ref, b7_ref, w8_ref, b8_ref,   # decoder
    enc_ref, dec_ref,
    *, precision,
):
    def linear(h, w_ref, b_ref):
        # Matmul operands in the weight dtype (bf16 by default); accumulate in
        # f32.  Biases are always f32; activations stay f32 (v5e-safe).
        return (
            jnp.dot(h.astype(w_ref.dtype), w_ref[...],
                    preferred_element_type=jnp.float32, precision=precision)
            + b_ref[...]
        )

    x = x_ref[...]                                   # (TB, 784) f32

    # ---- encoder: Linear->Tanh x3, then Linear (no activation) ----
    h = jnp.tanh(linear(x, w1_ref, b1_ref))          # (TB, 128)
    h = jnp.tanh(linear(h, w2_ref, b2_ref))          # (TB, 64)
    h = jnp.tanh(linear(h, w3_ref, b3_ref))          # (TB, 12)
    encoded = linear(h, w4_ref, b4_ref)              # (TB, 3) f32
    enc_ref[...] = encoded.astype(enc_ref.dtype)

    # ---- decoder: Linear->Tanh x3, then Linear->Sigmoid ----
    h = jnp.tanh(linear(encoded, w5_ref, b5_ref))    # (TB, 12)
    h = jnp.tanh(linear(h, w6_ref, b6_ref))          # (TB, 64)
    h = jnp.tanh(linear(h, w7_ref, b7_ref))          # (TB, 128)
    logits = linear(h, w8_ref, b8_ref)               # (TB, 784) f32
    dec_ref[...] = jax.nn.sigmoid(logits).astype(dec_ref.dtype)


def _prepare_params(params, weight_dtype):
    """Cast weights to weight_dtype; biases stay f32 (added to the f32 acc)."""
    out = []
    for i in range(8):
        out.append(params[2 * i].astype(weight_dtype))     # w_i  (in, out)
        out.append(params[2 * i + 1].astype(jnp.float32))  # b_i  (1, out)
    return out


def autoencoder_forward(x, params, *, tile_batch=512,
                        compute_dtype=jnp.bfloat16, precision=None):
    """x: (B, 784) float32.  params: flat list [w1, b1, ..., w8, b8], w as (in, out).

    compute_dtype: jnp.bfloat16 (default; matmul operands bf16, f32 accumulate)
    or jnp.float32 for exact parity with the PyTorch module (optionally pass
    precision=jax.lax.Precision.HIGHEST for guaranteed bit-level f32 matmuls).
    Returns (encoded (B, 3) f32, decoded (B, 784) compute_dtype).
    """
    B, F = x.shape
    assert F == IN_FEATS
    x = x.astype(jnp.float32)                 # kernel casts operands itself
    kparams = _prepare_params(params, compute_dtype)

    # Batch tile: multiple of 16 sublanes (covers bf16 packing), capped at 1024
    # (v7x VMEM headroom; <2% gain beyond TB~512-1024).  Aim for >=2 grid steps
    # when the batch allows it so v7x's second TensorCore gets work.
    tile_batch = max(16, _round_up(min(tile_batch, 1024), 16))
    b_min = _round_up(B, 16)
    n_steps = max(1, _cdiv(b_min, tile_batch))
    if b_min > 16:
        n_steps = max(n_steps, 2)
    TB = _round_up(_cdiv(b_min, n_steps), 16)
    Bp = _round_up(B, TB)
    grid = (Bp // TB,)

    if Bp != B:                               # batch pad only when needed
        x = jnp.pad(x, ((0, Bp - B), (0, 0)))

    # x / encoded / decoded tiled over the batch (software-pipelined DMA).
    x_spec = pl.BlockSpec((TB, IN_FEATS), lambda i: (i, 0))
    # Full-array parameter blocks with a constant index map: DMA'd once,
    # resident in VMEM across all grid steps.
    param_specs = [pl.BlockSpec(p.shape, lambda i: (0, 0)) for p in kparams]

    kernel = partial(_autoencoder_kernel, precision=precision)

    enc_p, dec_p = pl.pallas_call(
        kernel,
        out_shape=(
            jax.ShapeDtypeStruct((Bp, LATENT), jnp.float32),      # encoded
            jax.ShapeDtypeStruct((Bp, IN_FEATS), compute_dtype),  # decoded
        ),
        grid=grid,
        in_specs=[x_spec] + param_specs,
        out_specs=(
            pl.BlockSpec((TB, LATENT), lambda i: (i, 0)),
            pl.BlockSpec((TB, IN_FEATS), lambda i: (i, 0)),
        ),
        compiler_params=pltpu.CompilerParams(
            dimension_semantics=("parallel",),   # shard batch across TCs on v7x
            vmem_limit_bytes=32 * 1024 * 1024,   # safe on v7x's 64 MiB VMEM
        ),
    )(x, *kparams)

    if Bp != B:
        enc_p = enc_p[:B]
        dec_p = dec_p[:B]
    return enc_p, dec_p


def init_params(key):
    """PyTorch nn.Linear-style init (uniform +/- 1/sqrt(fan_in)).
    Weights stored as (in_features, out_features); biases as (1, out_features)."""
    params = []
    for (fan_in, fan_out) in _LAYER_DIMS:
        key, kw, kb = jax.random.split(key, 3)
        bound = 1.0 / math.sqrt(fan_in)
        w = jax.random.uniform(kw, (fan_in, fan_out), jnp.float32, -bound, bound)
        b = jax.random.uniform(kb, (1, fan_out), jnp.float32, -bound, bound)
        params.extend([w, b])
    return params


def reference_forward(x, params):
    """Pure-JAX reference for correctness check."""
    def lin(h, w, b):
        return h @ w + b

    h = jnp.tanh(lin(x, params[0], params[1]))
    h = jnp.tanh(lin(h, params[2], params[3]))
    h = jnp.tanh(lin(h, params[4], params[5]))
    enc = lin(h, params[6], params[7])
    h = jnp.tanh(lin(enc, params[8], params[9]))
    h = jnp.tanh(lin(h, params[10], params[11]))
    h = jnp.tanh(lin(h, params[12], params[13]))
    dec = jax.nn.sigmoid(lin(h, params[14], params[15]))
    return enc, dec


if __name__ == "__main__":
    key = jax.random.PRNGKey(0)
    kx, kp = jax.random.split(key)

    B = 8
    x = jax.random.uniform(kx, (B, IN_FEATS), jnp.float32)   # MNIST-flattened style input
    params = init_params(kp)

    enc_r, dec_r = reference_forward(x, params)

    # --- default bf16 path (recommended on all generations; f32 accumulate) ---
    enc16, dec16 = autoencoder_forward(x, params)
    enc16, dec16 = jax.block_until_ready((enc16, dec16))
    assert enc16.shape == (B, LATENT) and dec16.shape == (B, IN_FEATS)
    assert jnp.allclose(enc16, enc_r, atol=1e-1, rtol=1e-1)
    assert jnp.allclose(dec16.astype(jnp.float32), dec_r, atol=1e-1, rtol=1e-1)

    # --- f32 escape hatch: parity with the PyTorch module ---
    encoded, decoded = autoencoder_forward(x, params, compute_dtype=jnp.float32)
    encoded, decoded = jax.block_until_ready((encoded, decoded))
    assert encoded.shape == (B, LATENT) and decoded.shape == (B, IN_FEATS)
    assert jnp.allclose(encoded, enc_r, atol=1e-5, rtol=1e-5)
    assert jnp.allclose(decoded, dec_r, atol=1e-5, rtol=1e-5)

    print("KERNEL_OK")
</pallas_src>

<mosaic_0001>
module attributes {stable_mosaic.version = 11 : i64} {
  func.func @_autoencoder_kernel(%arg0: i32, %arg1: memref<16x784xf32, #tpu.memory_space<vmem>>, %arg2: memref<784x128xbf16, #tpu.memory_space<vmem>>, %arg3: memref<1x128xf32, #tpu.memory_space<vmem>>, %arg4: memref<128x64xbf16, #tpu.memory_space<vmem>>, %arg5: memref<1x64xf32, #tpu.memory_space<vmem>>, %arg6: memref<64x12xbf16, #tpu.memory_space<vmem>>, %arg7: memref<1x12xf32, #tpu.memory_space<vmem>>, %arg8: memref<12x3xbf16, #tpu.memory_space<vmem>>, %arg9: memref<1x3xf32, #tpu.memory_space<vmem>>, %arg10: memref<3x12xbf16, #tpu.memory_space<vmem>>, %arg11: memref<1x12xf32, #tpu.memory_space<vmem>>, %arg12: memref<12x64xbf16, #tpu.memory_space<vmem>>, %arg13: memref<1x64xf32, #tpu.memory_space<vmem>>, %arg14: memref<64x128xbf16, #tpu.memory_space<vmem>>, %arg15: memref<1x128xf32, #tpu.memory_space<vmem>>, %arg16: memref<128x784xbf16, #tpu.memory_space<vmem>>, %arg17: memref<1x784xf32, #tpu.memory_space<vmem>>, %arg18: memref<16x3xf32, #tpu.memory_space<vmem>>, %arg19: memref<16x784xbf16, #tpu.memory_space<vmem>>) attributes {dimension_semantics = [#tpu.dimension_semantics<parallel>], iteration_bounds = array<i64: 1>, scalar_prefetch = 0 : i64, scratch_operands = 0 : i64, tpu.core_type = #tpu.core_type<tc>, window_params = [{transform_indices = @transform_0, window_bounds = array<i64: 16, 784>}, {pipeline_mode = #tpu.pipeline_mode<synchronous>, transform_indices = @transform_1, window_bounds = array<i64: 784, 128>}, {pipeline_mode = #tpu.pipeline_mode<synchronous>, transform_indices = @transform_2, window_bounds = array<i64: 1, 128>}, {pipeline_mode = #tpu.pipeline_mode<synchronous>, transform_indices = @transform_3, window_bounds = array<i64: 128, 64>}, {pipeline_mode = #tpu.pipeline_mode<synchronous>, transform_indices = @transform_4, window_bounds = array<i64: 1, 64>}, {pipeline_mode = #tpu.pipeline_mode<synchronous>, transform_indices = @transform_5, window_bounds = array<i64: 64, 12>}, {pipeline_mode = #tpu.pipeline_mode<synchronous>, transform_indices = @transform_6, window_bounds = array<i64: 1, 12>}, {pipeline_mode = #tpu.pipeline_mode<synchronous>, transform_indices = @transform_7, window_bounds = array<i64: 12, 3>}, {pipeline_mode = #tpu.pipeline_mode<synchronous>, transform_indices = @transform_8, window_bounds = array<i64: 1, 3>}, {pipeline_mode = #tpu.pipeline_mode<synchronous>, transform_indices = @transform_9, window_bounds = array<i64: 3, 12>}, {pipeline_mode = #tpu.pipeline_mode<synchronous>, transform_indices = @transform_10, window_bounds = array<i64: 1, 12>}, {pipeline_mode = #tpu.pipeline_mode<synchronous>, transform_indices = @transform_11, window_bounds = array<i64: 12, 64>}, {pipeline_mode = #tpu.pipeline_mode<synchronous>, transform_indices = @transform_12, window_bounds = array<i64: 1, 64>}, {pipeline_mode = #tpu.pipeline_mode<synchronous>, transform_indices = @transform_13, window_bounds = array<i64: 64, 128>}, {pipeline_mode = #tpu.pipeline_mode<synchronous>, transform_indices = @transform_14, window_bounds = array<i64: 1, 128>}, {pipeline_mode = #tpu.pipeline_mode<synchronous>, transform_indices = @transform_15, window_bounds = array<i64: 128, 784>}, {pipeline_mode = #tpu.pipeline_mode<synchronous>, transform_indices = @transform_16, window_bounds = array<i64: 1, 784>}, {transform_indices = @transform_17, window_bounds = array<i64: 16, 3>}, {transform_indices = @transform_18, window_bounds = array<i64: 16, 784>}]} {
    %c0 = arith.constant 0 : index
    %c0_0 = arith.constant 0 : index
    %0 = vector.load %arg1[%c0, %c0_0] : memref<16x784xf32, #tpu.memory_space<vmem>>, vector<16x784xf32>
    %1 = arith.truncf %0 : vector<16x784xf32> to vector<16x784xbf16>
    %c0_1 = arith.constant 0 : index
    %c0_2 = arith.constant 0 : index
    %2 = vector.load %arg2[%c0_1, %c0_2] : memref<784x128xbf16, #tpu.memory_space<vmem>>, vector<784x128xbf16>
    %cst = arith.constant dense<0.000000e+00> : vector<16x128xf32>
    %3 = tpu.matmul %1, %2, %cst {dimension_numbers = #tpu.dot_dimension_numbers<[1], [0], [0], [1], [0, 0, 1, 1], [], []>} : vector<16x784xbf16>, vector<784x128xbf16>, vector<16x128xf32> -> vector<16x128xf32>
    %c0_3 = arith.constant 0 : index
    %c0_4 = arith.constant 0 : index
    %4 = vector.load %arg3[%c0_3, %c0_4] : memref<1x128xf32, #tpu.memory_space<vmem>>, vector<1x128xf32>
    %5 = vector.broadcast %4 : vector<1x128xf32> to vector<16x128xf32>
    %6 = arith.addf %3, %5 : vector<16x128xf32>
    %7 = math.tanh %6 : vector<16x128xf32>
    %8 = arith.truncf %7 : vector<16x128xf32> to vector<16x128xbf16>
    %c0_5 = arith.constant 0 : index
    %c0_6 = arith.constant 0 : index
    %9 = vector.load %arg4[%c0_5, %c0_6] : memref<128x64xbf16, #tpu.memory_space<vmem>>, vector<128x64xbf16>
    %cst_7 = arith.constant dense<0.000000e+00> : vector<16x64xf32>
    %10 = tpu.matmul %8, %9, %cst_7 {dimension_numbers = #tpu.dot_dimension_numbers<[1], [0], [0], [1], [0, 0, 1, 1], [], []>} : vector<16x128xbf16>, vector<128x64xbf16>, vector<16x64xf32> -> vector<16x64xf32>
    %c0_8 = arith.constant 0 : index
    %c0_9 = arith.constant 0 : index
    %11 = vector.load %arg5[%c0_8, %c0_9] : memref<1x64xf32, #tpu.memory_space<vmem>>, vector<1x64xf32>
    %12 = vector.broadcast %11 : vector<1x64xf32> to vector<16x64xf32>
    %13 = arith.addf %10, %12 : vector<16x64xf32>
    %14 = math.tanh %13 : vector<16x64xf32>
    %15 = arith.truncf %14 : vector<16x64xf32> to vector<16x64xbf16>
    %c0_10 = arith.constant 0 : index
    %c0_11 = arith.constant 0 : index
    %16 = vector.load %arg6[%c0_10, %c0_11] : memref<64x12xbf16, #tpu.memory_space<vmem>>, vector<64x12xbf16>
    %cst_12 = arith.constant dense<0.000000e+00> : vector<16x12xf32>
    %17 = tpu.matmul %15, %16, %cst_12 {dimension_numbers = #tpu.dot_dimension_numbers<[1], [0], [0], [1], [0, 0, 1, 1], [], []>} : vector<16x64xbf16>, vector<64x12xbf16>, vector<16x12xf32> -> vector<16x12xf32>
    %c0_13 = arith.constant 0 : index
    %c0_14 = arith.constant 0 : index
    %18 = vector.load %arg7[%c0_13, %c0_14] : memref<1x12xf32, #tpu.memory_space<vmem>>, vector<1x12xf32>
    %19 = vector.broadcast %18 : vector<1x12xf32> to vector<16x12xf32>
    %20 = arith.addf %17, %19 : vector<16x12xf32>
    %21 = math.tanh %20 : vector<16x12xf32>
    %22 = arith.truncf %21 : vector<16x12xf32> to vector<16x12xbf16>
    %c0_15 = arith.constant 0 : index
    %c0_16 = arith.constant 0 : index
    %23 = vector.load %arg8[%c0_15, %c0_16] : memref<12x3xbf16, #tpu.memory_space<vmem>>, vector<12x3xbf16>
    %cst_17 = arith.constant dense<0.000000e+00> : vector<16x3xf32>
    %24 = tpu.matmul %22, %23, %cst_17 {dimension_numbers = #tpu.dot_dimension_numbers<[1], [0], [0], [1], [0, 0, 1, 1], [], []>} : vector<16x12xbf16>, vector<12x3xbf16>, vector<16x3xf32> -> vector<16x3xf32>
    %c0_18 = arith.constant 0 : index
    %c0_19 = arith.constant 0 : index
    %25 = vector.load %arg9[%c0_18, %c0_19] : memref<1x3xf32, #tpu.memory_space<vmem>>, vector<1x3xf32>
    %26 = vector.broadcast %25 : vector<1x3xf32> to vector<16x3xf32>
    %27 = arith.addf %24, %26 : vector<16x3xf32>
    %c0_20 = arith.constant 0 : index
    %c0_21 = arith.constant 0 : index
    %28 = vector.load %arg18[%c0_20, %c0_21] : memref<16x3xf32, #tpu.memory_space<vmem>>, vector<16x3xf32>
    tpu.vector_store %arg18[%c0_20, %c0_21], %27 {strides = array<i32>} : memref<16x3xf32, #tpu.memory_space<vmem>>, vector<16x3xf32>,
    %29 = arith.truncf %27 : vector<16x3xf32> to vector<16x3xbf16>
    %c0_22 = arith.constant 0 : index
    %c0_23 = arith.constant 0 : index
    %30 = vector.load %arg10[%c0_22, %c0_23] : memref<3x12xbf16, #tpu.memory_space<vmem>>, vector<3x12xbf16>
    %cst_24 = arith.constant dense<0.000000e+00> : vector<16x12xf32>
    %31 = tpu.matmul %29, %30, %cst_24 {dimension_numbers = #tpu.dot_dimension_numbers<[1], [0], [0], [1], [0, 0, 1, 1], [], []>} : vector<16x3xbf16>, vector<3x12xbf16>, vector<16x12xf32> -> vector<16x12xf32>
    %c0_25 = arith.constant 0 : index
    %c0_26 = arith.constant 0 : index
    %32 = vector.load %arg11[%c0_25, %c0_26] : memref<1x12xf32, #tpu.memory_space<vmem>>, vector<1x12xf32>
    %33 = vector.broadcast %32 : vector<1x12xf32> to vector<16x12xf32>
    %34 = arith.addf %31, %33 : vector<16x12xf32>
    %35 = math.tanh %34 : vector<16x12xf32>
    %36 = arith.truncf %35 : vector<16x12xf32> to vector<16x12xbf16>
    %c0_27 = arith.constant 0 : index
    %c0_28 = arith.constant 0 : index
    %37 = vector.load %arg12[%c0_27, %c0_28] : memref<12x64xbf16, #tpu.memory_space<vmem>>, vector<12x64xbf16>
    %cst_29 = arith.constant dense<0.000000e+00> : vector<16x64xf32>
    %38 = tpu.matmul %36, %37, %cst_29 {dimension_numbers = #tpu.dot_dimension_numbers<[1], [0], [0], [1], [0, 0, 1, 1], [], []>} : vector<16x12xbf16>, vector<12x64xbf16>, vector<16x64xf32> -> vector<16x64xf32>
    %c0_30 = arith.constant 0 : index
    %c0_31 = arith.constant 0 : index
    %39 = vector.load %arg13[%c0_30, %c0_31] : memref<1x64xf32, #tpu.memory_space<vmem>>, vector<1x64xf32>
    %40 = vector.broadcast %39 : vector<1x64xf32> to vector<16x64xf32>
    %41 = arith.addf %38, %40 : vector<16x64xf32>
    %42 = math.tanh %41 : vector<16x64xf32>
    %43 = arith.truncf %42 : vector<16x64xf32> to vector<16x64xbf16>
    %c0_32 = arith.constant 0 : index
    %c0_33 = arith.constant 0 : index
    %44 = vector.load %arg14[%c0_32, %c0_33] : memref<64x128xbf16, #tpu.memory_space<vmem>>, vector<64x128xbf16>
    %cst_34 = arith.constant dense<0.000000e+00> : vector<16x128xf32>
    %45 = tpu.matmul %43, %44, %cst_34 {dimension_numbers = #tpu.dot_dimension_numbers<[1], [0], [0], [1], [0, 0, 1, 1], [], []>} : vector<16x64xbf16>, vector<64x128xbf16>, vector<16x128xf32> -> vector<16x128xf32>
    %c0_35 = arith.constant 0 : index
    %c0_36 = arith.constant 0 : index
    %46 = vector.load %arg15[%c0_35, %c0_36] : memref<1x128xf32, #tpu.memory_space<vmem>>, vector<1x128xf32>
    %47 = vector.broadcast %46 : vector<1x128xf32> to vector<16x128xf32>
    %48 = arith.addf %45, %47 : vector<16x128xf32>
    %49 = math.tanh %48 : vector<16x128xf32>
    %50 = arith.truncf %49 : vector<16x128xf32> to vector<16x128xbf16>
    %c0_37 = arith.constant 0 : index
    %c0_38 = arith.constant 0 : index
    %51 = vector.load %arg16[%c0_37, %c0_38] : memref<128x784xbf16, #tpu.memory_space<vmem>>, vector<128x784xbf16>
    %cst_39 = arith.constant dense<0.000000e+00> : vector<16x784xf32>
    %52 = tpu.matmul %50, %51, %cst_39 {dimension_numbers = #tpu.dot_dimension_numbers<[1], [0], [0], [1], [0, 0, 1, 1], [], []>} : vector<16x128xbf16>, vector<128x784xbf16>, vector<16x784xf32> -> vector<16x784xf32>
    %c0_40 = arith.constant 0 : index
    %c0_41 = arith.constant 0 : index
    %53 = vector.load %arg17[%c0_40, %c0_41] : memref<1x784xf32, #tpu.memory_space<vmem>>, vector<1x784xf32>
    %54 = vector.broadcast %53 : vector<1x784xf32> to vector<16x784xf32>
    %55 = arith.addf %52, %54 : vector<16x784xf32>
    %56 = arith.negf %55 : vector<16x784xf32>
    %57 = math.exp %56 : vector<16x784xf32>
    %cst_42 = arith.constant 1.000000e+00 : f32
    %58 = vector.broadcast %cst_42 : f32 to vector<16x784xf32>
    %59 = arith.addf %58, %57 : vector<16x784xf32>
    %60 = arith.divf %58, %59 : vector<16x784xf32>
    %61 = arith.truncf %60 : vector<16x784xf32> to vector<16x784xbf16>
    %c0_43 = arith.constant 0 : index
    %c0_44 = arith.constant 0 : index
    %62 = vector.load %arg19[%c0_43, %c0_44] : memref<16x784xbf16, #tpu.memory_space<vmem>>, vector<16x784xbf16>
    tpu.vector_store %arg19[%c0_43, %c0_44], %61 {strides = array<i32>} : memref<16x784xbf16, #tpu.memory_space<vmem>>, vector<16x784xbf16>,
    return
  }
  func.func @transform_0(%arg0: i32) -> (i32, i32) {
    %c0_i32 = arith.constant 0 : i32
    %c0_i32_0 = arith.constant 0 : i32
    return %arg0, %c0_i32 : i32, i32
  }
  func.func @transform_1(%arg0: i32) -> (i32, i32) {
    %c0_i32 = arith.constant 0 : i32
    %c0_i32_0 = arith.constant 0 : i32
    %c0_i32_1 = arith.constant 0 : i32
    return %c0_i32, %c0_i32_0 : i32, i32
  }
  func.func @transform_2(%arg0: i32) -> (i32, i32) {
    %c0_i32 = arith.constant 0 : i32
    %c0_i32_0 = arith.constant 0 : i32
    %c0_i32_1 = arith.constant 0 : i32
    return %c0_i32, %c0_i32_0 : i32, i32
  }
  func.func @transform_3(%arg0: i32) -> (i32, i32) {
    %c0_i32 = arith.constant 0 : i32
    %c0_i32_0 = arith.constant 0 : i32
    %c0_i32_1 = arith.constant 0 : i32
    return %c0_i32, %c0_i32_0 : i32, i32
  }
  func.func @transform_4(%arg0: i32) -> (i32, i32) {
    %c0_i32 = arith.constant 0 : i32
    %c0_i32_0 = arith.constant 0 : i32
    %c0_i32_1 = arith.constant 0 : i32
    return %c0_i32, %c0_i32_0 : i32, i32
  }
  func.func @transform_5(%arg0: i32) -> (i32, i32) {
    %c0_i32 = arith.constant 0 : i32
    %c0_i32_0 = arith.constant 0 : i32
    %c0_i32_1 = arith.constant 0 : i32
    return %c0_i32, %c0_i32_0 : i32, i32
  }
  func.func @transform_6(%arg0: i32) -> (i32, i32) {
    %c0_i32 = arith.constant 0 : i32
    %c0_i32_0 = arith.constant 0 : i32
    %c0_i32_1 = arith.constant 0 : i32
    return %c0_i32, %c0_i32_0 : i32, i32
  }
  func.func @transform_7(%arg0: i32) -> (i32, i32) {
    %c0_i32 = arith.constant 0 : i32
    %c0_i32_0 = arith.constant 0 : i32
    %c0_i32_1 = arith.constant 0 : i32
    return %c0_i32, %c0_i32_0 : i32, i32
  }
  func.func @transform_8(%arg0: i32) -> (i32, i32) {
    %c0_i32 = arith.constant 0 : i32
    %c0_i32_0 = arith.constant 0 : i32
    %c0_i32_1 = arith.constant 0 : i32
    return %c0_i32, %c0_i32_0 : i32, i32
  }
  func.func @transform_9(%arg0: i32) -> (i32, i32) {
    %c0_i32 = arith.constant 0 : i32
    %c0_i32_0 = arith.constant 0 : i32
    %c0_i32_1 = arith.constant 0 : i32
    return %c0_i32, %c0_i32_0 : i32, i32
  }
  func.func @transform_10(%arg0: i32) -> (i32, i32) {
    %c0_i32 = arith.constant 0 : i32
    %c0_i32_0 = arith.constant 0 : i32
    %c0_i32_1 = arith.constant 0 : i32
    return %c0_i32, %c0_i32_0 : i32, i32
  }
  func.func @transform_11(%arg0: i32) -> (i32, i32) {
    %c0_i32 = arith.constant 0 : i32
    %c0_i32_0 = arith.constant 0 : i32
    %c0_i32_1 = arith.constant 0 : i32
    return %c0_i32, %c0_i32_0 : i32, i32
  }
  func.func @transform_12(%arg0: i32) -> (i32, i32) {
    %c0_i32 = arith.constant 0 : i32
    %c0_i32_0 = arith.constant 0 : i32
    %c0_i32_1 = arith.constant 0 : i32
    return %c0_i32, %c0_i32_0 : i32, i32
  }
  func.func @transform_13(%arg0: i32) -> (i32, i32) {
    %c0_i32 = arith.constant 0 : i32
    %c0_i32_0 = arith.constant 0 : i32
    %c0_i32_1 = arith.constant 0 : i32
    return %c0_i32, %c0_i32_0 : i32, i32
  }
  func.func @transform_14(%arg0: i32) -> (i32, i32) {
    %c0_i32 = arith.constant 0 : i32
    %c0_i32_0 = arith.constant 0 : i32
    %c0_i32_1 = arith.constant 0 : i32
    return %c0_i32, %c0_i32_0 : i32, i32
  }
  func.func @transform_15(%arg0: i32) -> (i32, i32) {
    %c0_i32 = arith.constant 0 : i32
    %c0_i32_0 = arith.constant 0 : i32
    %c0_i32_1 = arith.constant 0 : i32
    return %c0_i32, %c0_i32_0 : i32, i32
  }
  func.func @transform_16(%arg0: i32) -> (i32, i32) {
    %c0_i32 = arith.constant 0 : i32
    %c0_i32_0 = arith.constant 0 : i32
    %c0_i32_1 = arith.constant 0 : i32
    return %c0_i32, %c0_i32_0 : i32, i32
  }
  func.func @transform_17(%arg0: i32) -> (i32, i32) {
    %c0_i32 = arith.constant 0 : i32
    %c0_i32_0 = arith.constant 0 : i32
    return %arg0, %c0_i32 : i32, i32
  }
  func.func @transform_18(%arg0: i32) -> (i32, i32) {
    %c0_i32 = arith.constant 0 : i32
    %c0_i32_0 = arith.constant 0 : i32
    return %arg0, %c0_i32 : i32, i32
  }
}

</mosaic_0001>

<bundles_post_ra>
// kernel: tpu_custom_call.1
= control target key start
LH: loop header
LB: loop body
LE: loop exit
PB: predicated region body
PF: predicated region fallthrough
CT: control target
= control target key end

     0   :  { %s3088_s0 = inlined_call_operand.vmem [shape: f32[16,784], index: 0, kind: input, shape index: {}]   ;;  %s3089_s1 = inlined_call_operand.vmem [shape: bf16[784,128], index: 1, kind: input, shape index: {}]   ;;  %s3090_s2 = inlined_call_operand.vmem [shape: f32[1,128], index: 2, kind: input, shape index: {}]   ;;  %s3091_s3 = inlined_call_operand.vmem [shape: bf16[128,64], index: 3, kind: input, shape index: {}]   ;;  %s3092_s4 = inlined_call_operand.vmem [shape: f32[1,64], index: 4, kind: input, shape index: {}]   ;;  %s3093_s5 = inlined_call_operand.vmem [shape: bf16[64,12], index: 5, kind: input, shape index: {}]   ;;  %s3094_s6 = inlined_call_operand.vmem [shape: f32[1,12], index: 6, kind: input, shape index: {}]   ;;  %s3095_s7 = inlined_call_operand.vmem [shape: bf16[12,3], index: 7, kind: input, shape index: {}]   ;;  %s3096_s8 = inlined_call_operand.vmem [shape: f32[1,3], index: 8, kind: input, shape index: {}]   ;;  %s3097_s9 = inlined_call_operand.vmem [shape: bf16[3,12], index: 9, kind: input, shape index: {}]   ;;  %s3098_s10 = inlined_call_operand.vmem [shape: f32[1,12], index: 10, kind: input, shape index: {}]   ;;  %s3099_s11 = inlined_call_operand.vmem [shape: bf16[12,64], index: 11, kind: input, shape index: {}]   ;;  %s3100_s12 = inlined_call_operand.vmem [shape: f32[1,64], index: 12, kind: input, shape index: {}]   ;;  %s3101_s13 = inlined_call_operand.vmem [shape: bf16[64,128], index: 13, kind: input, shape index: {}]   ;;  %s3102_s14 = inlined_call_operand.vmem [shape: f32[1,128], index: 14, kind: input, shape index: {}]   ;;  %s3103_s15 = inlined_call_operand.vmem [shape: bf16[128,784], index: 15, kind: input, shape index: {}]   ;;  %s3104_s16 = inlined_call_operand.vmem [shape: f32[1,784], index: 16, kind: input, shape index: {}]   ;;  %s3105_s17 = inlined_call_operand.vmem [shape: f32[16,3], index: 17, kind: output, shape index: {0}]   ;;  %s3106_s18 = inlined_call_operand.hbm [shape: bf16[16,784], index: 18, kind: output, shape index: {1}]  }
   0x1   :  { %3109 = sst [smem:[#allocation5_spill]] %s3088_s0 }
   0x2   :  { %3110 = sst [smem:[#allocation6_spill]] %s3089_s1 }
   0x3   :  { %3111 = sst [smem:[#allocation7_spill]] %s3090_s2 }
   0x4   :  { %s3112_s29 = sld [smem:[#allocation6_spill]]  ;;  %s3113_s22 = sld [smem:[#allocation5_spill]]  ;;  %v2462_v43 = vmov 0.0   ;;  %vm2463_vm0 = vmmov 0   ;;  %vm480_vm1 = vcmask 130048  }
   0xa   :  { %v2211_v0 = vld [vmem:[%s3112_s29 + $0x40] sm:$0xff]   ;;  %v2215_v4 = vld [vmem:[%s3112_s29 + $0x48] sm:$0xff]   ;;  %v2219_v8 = vld [vmem:[%s3112_s29 + $0x50] sm:$0xff]  }
   0xb   :  { %v2212_v1 = vld [vmem:[%s3112_s29] sm:$0xff]   ;;  %2014 = vmatprep.subr.bf16.mxu0 %v2211_v0  ;;  %v2216_v5 = vld [vmem:[%s3112_s29 + $0x8] sm:$0xff]   ;;  %v2220_v9 = vld [vmem:[%s3112_s29 + $0x10] sm:$0xff]  }
   0xc   :  { %v2213_v2 = vld [vmem:[%s3112_s29 + $0xc0] sm:$0xff]   ;;  %2015 = vmatpush3.bf16.msra.mxu0 %v2212_v1  ;;  %v2217_v6 = vld [vmem:[%s3112_s29 + $0xc8] sm:$0xff]   ;;  %v2221_v10 = vld [vmem:[%s3112_s29 + $0xd0] sm:$0xff]  }
   0xd   :  { %v2214_v3 = vld [vmem:[%s3112_s29 + $0x80] sm:$0xff]   ;;  %2036 = vmatprep.subr.bf16.mxu1 %v2213_v2  ;;  %2016 = vmatprep.subr.bf16.mxu0 %v2215_v4  ;;  %v2218_v7 = vld [vmem:[%s3112_s29 + $0x88] sm:$0xff]   ;;  %v2222_v11 = vld [vmem:[%s3112_s29 + $0x90] sm:$0xff]  }
   0xe   :  { %2037 = vmatpush3.bf16.msra.mxu1 %v2214_v3  ;;  %v2223_v12 = vld [vmem:[%s3112_s29 + $0x58] sm:$0xff]   ;;  %v2227_v16 = vld [vmem:[%s3112_s29 + $0x60] sm:$0xff]   ;;  %v2231_v20 = vld [vmem:[%s3112_s29 + $0x68] sm:$0xff]  }
   0xf   :  { %2038 = vmatprep.subr.bf16.mxu1 %v2217_v6  ;;  %v2224_v13 = vld [vmem:[%s3112_s29 + $0x18] sm:$0xff]   ;;  %v2228_v17 = vld [vmem:[%s3112_s29 + $0x20] sm:$0xff]   ;;  %v2232_v21 = vld [vmem:[%s3112_s29 + $0x28] sm:$0xff]  }
  0x10   :  { %2017 = vmatpush3.bf16.msra.mxu0 %v2216_v5  ;;  %v2225_v14 = vld [vmem:[%s3112_s29 + $0xd8] sm:$0xff]   ;;  %v2229_v18 = vld [vmem:[%s3112_s29 + $0xe0] sm:$0xff]   ;;  %v2233_v22 = vld [vmem:[%s3112_s29 + $0xe8] sm:$0xff]  }
  0x11   :  { %2018 = vmatprep.subr.bf16.mxu0 %v2219_v8  ;;  %v2226_v15 = vld [vmem:[%s3112_s29 + $0x98] sm:$0xff]   ;;  %v2230_v19 = vld [vmem:[%s3112_s29 + $0xa0] sm:$0xff]   ;;  %v2234_v23 = vld [vmem:[%s3112_s29 + $0xa8] sm:$0xff]  }
  0x12   :  { %2039 = vmatpush3.bf16.msra.mxu1 %v2218_v7  ;;  %v2235_v24 = vld [vmem:[%s3112_s29 + $0x70] sm:$0xff]   ;;  %v2239_v28 = vld [vmem:[%s3112_s29 + $0x78] sm:$0xff]   ;;  %v61_v31 = vld [vmem:[%s3113_s22 + $0x8] sm:$0xff] }
  0x13   :  { %2040 = vmatprep.subr.bf16.mxu1 %v2221_v10  ;;  %v2236_v25 = vld [vmem:[%s3112_s29 + $0x30] sm:$0xff]   ;;  %v2240_v29 = vld [vmem:[%s3112_s29 + $0x38] sm:$0xff]   ;;  %v68_v32 = vld [vmem:[%s3113_s22 + $0x40] sm:$0xff] }
  0x14   :  { %2019 = vmatpush3.bf16.msra.mxu0 %v2220_v9  ;;  %v2237_v26 = vld [vmem:[%s3112_s29 + $0xf0] sm:$0xff]   ;;  %v2241_v30 = vld [vmem:[%s3112_s29 + $0xf8] sm:$0xff]   ;;  %v75_v33 = vpack.c.bf16 %v68_v32, %v61_v31  ;;  %v60_v35 = vld [vmem:[%s3113_s22] sm:$0xff] }
  0x15   :  { %2020 = vmatprep.subr.bf16.mxu0 %v2223_v12  ;;  %v2238_v27 = vld [vmem:[%s3112_s29 + $0xb0] sm:$0xff]   ;;  %v2242_v34 = vld [vmem:[%s3112_s29 + $0xb8] sm:$0xff]   ;;  %v2243_v38 = vld [vmem:[%s3112_s29 + $0x140] sm:$0xff]  }
  0x16   :  { %2041 = vmatpush3.bf16.msra.mxu1 %v2222_v11  ;;  %v67_v36 = vld [vmem:[%s3113_s22 + $0x38] sm:$0xff]  ;;  %516 = vmatprep.mubr.bf16.mxu0 %v75_v33  ;;  %v70_v40 = vld [vmem:[%s3113_s22 + $0x50] sm:$0xff]  ;;  %v2244_v42 = vld [vmem:[%s3112_s29 + $0x100] sm:$0xff]  }
  0x17   :  { %2042 = vmatprep.subr.bf16.mxu1 %v2225_v14  ;;  %v74_v37 = vpack.c.bf16 %v67_v36, %v60_v35  ;;  %v63_v39 = vld [vmem:[%s3113_s22 + $0x18] sm:$0xff]  ;;  %v62_v44 = vld [vmem:[%s3113_s22 + $0x10] sm:$0xff]  ;;  %v69_v45 = vld [vmem:[%s3113_s22 + $0x48] sm:$0xff] }
  0x18   :  { %2021 = vmatpush3.bf16.msra.mxu0 %v2224_v13  ;;  %v77_v41 = vpack.c.bf16 %v70_v40, %v63_v39  ;;  %v76_v46 = vpack.c.bf16 %v69_v45, %v62_v44  ;;  %v2245_v47 = vld [vmem:[%s3112_s29 + $0x148] sm:$0xff]   ;;  %v2247_v49 = vld [vmem:[%s3112_s29 + $0x150] sm:$0xff]   ;;  %v2249_v51 = vld [vmem:[%s3112_s29 + $0x158] sm:$0xff]  }
  0x19   :  { %2022 = vmatprep.subr.bf16.mxu0 %v2227_v16  ;;  %v2246_v48 = vld [vmem:[%s3112_s29 + $0x108] sm:$0xff]   ;;  %v2248_v50 = vld [vmem:[%s3112_s29 + $0x110] sm:$0xff]   ;;  %v2250_v52 = vld [vmem:[%s3112_s29 + $0x118] sm:$0xff]  }
  0x1a   :  { %2043 = vmatpush3.bf16.msra.mxu1 %v2226_v15  ;;  %557 = vmatprep.mubr.bf16.mxu1 %v77_v41  ;;  %v2251_v53 = vld [vmem:[%s3112_s29 + $0x160] sm:$0xff]   ;;  %v2253_v55 = vld [vmem:[%s3112_s29 + $0x168] sm:$0xff]   ;;  %v2255_v59 = vld [vmem:[%s3112_s29 + $0x170] sm:$0xff]  }
  0x1b   :  { %2044 = vmatprep.subr.bf16.mxu1 %v2229_v18  ;;  %v2252_v54 = vld [vmem:[%s3112_s29 + $0x120] sm:$0xff]   ;;  %v65_v57 = vld [vmem:[%s3113_s22 + $0x28] sm:$0xff]  ;;  %v66_v62 = vld [vmem:[%s3113_s22 + $0x30] sm:$0xff] }
  0x1c   :  { %2023 = vmatpush3.bf16.msra.mxu0 %v2228_v17  ;;  %v2259_v56 = vld [vmem:[%s3112_s29 + $0x180] sm:$0xff]   ;;  %v2254_v58 = vld [vmem:[%s3112_s29 + $0x128] sm:$0xff]   ;;  %v2256_v1 = vld [vmem:[%s3112_s29 + $0x130] sm:$0xff]  }
  0x1d   :  { %2024 = vmatprep.subr.bf16.mxu0 %v2231_v20  ;;  %v72_v60 = vld [vmem:[%s3113_s22 + $0x60] sm:$0xff]  ;;  %v73_v63 = vld [vmem:[%s3113_s22 + $0x68] sm:$0xff]  ;;  %v2257_v2 = vld [vmem:[%s3112_s29 + $0x178] sm:$0xff]  }
  0x1e   :  { %2045 = vmatpush3.bf16.msra.mxu1 %v2230_v19  ;;  %v79_v61 = vpack.c.bf16 %v72_v60, %v65_v57  ;;  %v80_v0 = vpack.c.bf16 %v73_v63, %v66_v62  ;;  %v2258_v3 = vld [vmem:[%s3112_s29 + $0x138] sm:$0xff]   ;;  %v64_v4 = vld [vmem:[%s3113_s22 + $0x20] sm:$0xff] }
  0x1f   :  { %2046 = vmatprep.subr.bf16.mxu1 %v2233_v22  ;;  %v71_v5 = vld [vmem:[%s3113_s22 + $0x58] sm:$0xff] }
  0x20   :  { %2025 = vmatpush3.bf16.msra.mxu0 %v2232_v21  ;;  %v78_v6 = vpack.c.bf16 %v71_v5, %v64_v4 }
  0x21   :  { %2026 = vmatprep.subr.bf16.mxu0 %v2235_v24 }
  0x22   :  { %2047 = vmatpush3.bf16.msra.mxu1 %v2234_v23 }
  0x23   :  { %2048 = vmatprep.subr.bf16.mxu1 %v2237_v26 }
  0x24   :  { %2027 = vmatpush3.bf16.msra.mxu0 %v2236_v25 }
  0x25   :  { %2028 = vmatprep.subr.bf16.mxu0 %v2239_v28 }
  0x26   :  { %2049 = vmatpush3.bf16.msra.mxu1 %v2238_v27 }
  0x27   :  { %2050 = vmatprep.subr.bf16.mxu1 %v2241_v30 }
  0x28   :  { %2029 = vmatpush3.bf16.msra.mxu0 %v2240_v29 }
  0x29   :  { %2058 = vmatprep.subr.bf16.mxu0 %v2243_v38 }
  0x2a   :  { %2051 = vmatpush3.bf16.msra.mxu1 %v2242_v34 }
  0x2b   :  { %2116 = vmatprep.subr.bf16.mxu1 %v2462_v43  ;;  %517 = vmatmul.mubr.bf16.vlgmr.msra.gmra.mrb[0].mxu0 %v74_v37 }
  0x2c   :  { %2059 = vmatpush3.bf16.msra.mxu0 %v2244_v42  ;;  %598 = vmatprep.mubr.bf16.mxu0 %v79_v61 }
  0x2d   :  { %558 = vmatmul.mubr.bf16.vlgmr.msra.gmra.mrb[0].mxu1 %v76_v46  ;;  %2060 = vmatprep.subr.bf16.mxu0 %v2245_v47 }
  0x2e   :  { %2118 = vmatprep.mubr.msk.bf16.mxu1 %vm2463_vm0, %v2462_v43  ;;  %2117 = vmatpush3.bf16.msra.mxu1 %v2259_v56 }
  0x2f   :  { %2122 = vmatprep.subr.bf16.mxu1 %v2462_v43 }
  0x30   :  { %2061 = vmatpush3.bf16.msra.mxu0 %v2246_v48 }
  0x31   :  { %2062 = vmatprep.subr.bf16.mxu0 %v2247_v49 }
  0x34   :  { %2063 = vmatpush3.bf16.msra.mxu0 %v2248_v50 }
  0x35   :  { %2064 = vmatprep.subr.bf16.mxu0 %v2249_v51  ;;  %2119 = vmatmul.mubr.msk.bf16.vlgmr.msra.gmra.mrb[4].mxu1 %vm480_vm1, %v80_v0 }
  0x36   :  { %2138 = vmatprep.mubr.msk.bf16.mxu1 %vm2463_vm0, %v2462_v43 }
  0x38   :  { %2065 = vmatpush3.bf16.msra.mxu0 %v2250_v52 }
  0x39   :  { %2066 = vmatprep.subr.bf16.mxu0 %v2251_v53 }
  0x3c   :  { %2067 = vmatpush3.bf16.msra.mxu0 %v2252_v54 }
  0x3d   :  { %2068 = vmatprep.subr.bf16.mxu0 %v2253_v55 }
  0x40   :  { %2069 = vmatpush3.bf16.msra.mxu0 %v2254_v58 }
  0x41   :  { %2070 = vmatprep.subr.bf16.mxu0 %v2255_v59 }
  0x44   :  { %2071 = vmatpush3.bf16.msra.mxu0 %v2256_v1 }
  0x45   :  { %2072 = vmatprep.subr.bf16.mxu0 %v2257_v2 }
  0x48   :  { %2073 = vmatpush3.bf16.msra.mxu0 %v2258_v3 }
  0x49   :  { %2142 = vmatprep.subr.bf16.mxu0 %v2462_v43 }
  0x4b   :  { %599 = vmatmul.mubr.bf16.vlgmr.msra.gmra.mrb[4].mxu0 %v78_v6 }
  0x4c   :  { %2150 = vmatprep.mubr.msk.bf16.mxu0 %vm2463_vm0, %v2462_v43 }
  0x4d   :  { %24 = vsyncpa [#allocation3], 0  ;;  %v2260_v7 = vld [vmem:[%s3091_s3] sm:$0xff]   ;;  %v2261_v8 = vld [vmem:[%s3091_s3 + $0x8] sm:$0xff]   ;;  %s3114_s21 = sld [smem:[#allocation7_spill]]  ;;  %vm805_vm2 = vcmask 523264  }
  0x4e   :  { %2123 = vmatpush3.bf16.msra.mxu1 %v2260_v7  ;;  %v2262_v9 = vld [vmem:[%s3091_s3 + $0x10] sm:$0xff]   ;;  %v2263_v10 = vld [vmem:[%s3091_s3 + $0x18] sm:$0xff]   ;;  %v2264_v11 = vld [vmem:[%s3091_s3 + $0x20] sm:$0xff]   ;;  %vm871_vm3 = vcmask 1045504   ;;  %vm931_vm4 = vcmask 1040384   ;;  %vm932_vm5 = vcmask 1041408  }
  0x4f   :  { %2124 = vmatprep.subr.bf16.mxu1 %v2462_v43  ;;  %v2265_v12 = vld [vmem:[%s3091_s3 + $0x28] sm:$0xff]   ;;  %v2266_v13 = vld [vmem:[%s3091_s3 + $0x30] sm:$0xff]   ;;  %v2267_v14 = vld [vmem:[%s3091_s3 + $0x38] sm:$0xff]   ;;  %vm867_vm6 = vcmask 97280   ;;  %vm916_vm7 = vcmask 23552   ;;  %vm1822_vm8 = vcmask 125952  }
  0x50   :  { %v2268_v50 = vld [vmem:[%s3093_s5] sm:$0xff]   ;;  %v2269_v51 = vld [vmem:[%s3093_s5 + $0x8] sm:$0xff]   ;;  %v2270_v52 = vld [vmem:[%s3093_s5 + $0x10] sm:$0xff]  }
  0x51   :  { %2143 = vmatpush3.bf16.msra.mxu0 %v2268_v50  ;;  %v2271_v53 = vld [vmem:[%s3093_s5 + $0x18] sm:$0xff]   ;;  %v1899_v54 = vld [vmem:[%s3092_s4] ss:$0 sm:$0xff]  ;;  %v2296_v50 = vld [vmem:[%s3103_s15 + $0xa8] ss:$28 sps:$4 sm:$0xff]  }
  0x52   :  { %2125 = vmatpush3.bf16.msra.mxu1 %v2261_v8  ;;  %2144 = vmatprep.subr.bf16.mxu0 %v2462_v43  ;;  %v2272_v0 = vld [vmem:[%s3095_s7] sm:$0x3f]  }
  0x53   :  { %2126 = vmatprep.subr.bf16.mxu1 %v2462_v43  ;;  %v1848_v16 = vld [vmem:[%s3114_s21] ss:$0 sm:$0xff]  ;;  %v873_v1 = vsel %vm871_vm3, %v2272_v0, 0  ;;  %v2295_v0 = vld [vmem:[%s3103_s15 + $0x7c] ss:$28 sps:$4 sm:$0xff]  }
  0x54   :  { %v1908_v2 = vld [vmem:[%s3094_s6] ss:$0 sm:$0xff] }
  0x55   :  { %2145 = vmatpush3.bf16.msra.mxu0 %v2269_v51  ;;  %v1919_v51 = vld [vmem:[%s3100_s12] ss:$0 sm:$0xff] }
  0x56   :  { %2127 = vmatpush3.bf16.msra.mxu1 %v2262_v9  ;;  %2146 = vmatprep.subr.bf16.mxu0 %v2462_v43  ;;  %v2464_v9 = vmov 65535  }
  0x57   :  { %2128 = vmatprep.subr.bf16.mxu1 %v2462_v43 }
  0x59   :  { %2147 = vmatpush3.bf16.msra.mxu0 %v2270_v52 }
  0x5a   :  { %2129 = vmatpush3.bf16.msra.mxu1 %v2263_v10  ;;  %2148 = vmatprep.subr.bf16.mxu0 %v2462_v43  ;;  %v933_v10 = vsel %vm931_vm4, 4294967295, %v2464_v9  ;;  %v2313_v9 = vld [vmem:[%s3103_s15 + $0x124] ss:$28 sps:$4 sm:$0xff]  }
  0x5b   :  { %2130 = vmatprep.subr.bf16.mxu1 %v2462_v43 }
  0x5d   :  { %2149 = vmatpush3.bf16.msra.mxu0 %v2271_v53 }
  0x5e   :  { %2131 = vmatpush3.bf16.msra.mxu1 %v2264_v11  ;;  %2172 = vmatprep.subr.bf16.mxu0 %v2462_v43  ;;  %v920_v11 = vld [vmem:[%s3097_s9] sm:$0x3] }
  0x5f   :  { %2132 = vmatprep.subr.bf16.mxu1 %v2462_v43 }
  0x62   :  { %2133 = vmatpush3.bf16.msra.mxu1 %v2265_v12  ;;  %v934_v12 = vsel %vm932_vm5, %v933_v10, 0  ;;  %v2308_v10 = vld [vmem:[%s3103_s15 + $0x118] ss:$28 sps:$4 sm:$0xff]  }
  0x63   :  { %2134 = vmatprep.subr.bf16.mxu1 %v2462_v43 }
  0x66   :  { %2135 = vmatpush3.bf16.msra.mxu1 %v2266_v13 }
  0x67   :  { %2136 = vmatprep.subr.bf16.mxu1 %v2462_v43 }
  0x6a   :  { %2137 = vmatpush3.bf16.msra.mxu1 %v2267_v14 }
  0x6b   :  { %2154 = vmatprep.subr.bf16.mxu1 %v2462_v43 }
  0xfe   :  { %v2030_v15 = vpop.f32.mrb[0].mxu0 }
  0xff   :  { %v2031_v17 = vpop.f32.mrb[1].mxu0 }
 0x100   :  { %v2032_v18 = vadd.f32 %v2031_v17, %v2030_v15  ;;  %v2033_v19 = vpop.f32.mrb[2].mxu0  ;;  %v2052_v20 = vpop.f32.mrb[0].mxu1  ;;  %v936_v15 = vand.u32 %v934_v12, %v920_v11  ;;  %v1914_v17 = vld [vmem:[%s3096_s8] ss:$0 sm:$0xff]  ;;  %v2316_v12 = vld [vmem:[%s3103_s15 + $0x154] ss:$28 sps:$4 sm:$0xff]  }
 0x101   :  { %v2034_v21 = vpop.f32.mrb[3].mxu0  ;;  %v2053_v24 = vpop.f32.mrb[1].mxu1  ;;  %v2311_v11 = vld [vmem:[%s3103_s15 + $0x120] ss:$28 sps:$4 sm:$0xff]  }
 0x102   :  { %v519_v22 = vadd.f32 %v2032_v18, %v1848_v16  ;;  %v2035_v23 = vadd.f32 %v2034_v21, %v2033_v19  ;;  %v2054_v25 = vadd.f32 %v2053_v24, %v2052_v20  ;;  %v2055_v26 = vpop.f32.mrb[2].mxu1 }
 0x103   :  { %v2056_v28 = vpop.f32.mrb[3].mxu1 }
 0x104   :  { %v522_v27 = vadd.f32 %v2035_v23, %v1848_v16  ;;  %v560_v29 = vadd.f32 %v2054_v25, %v519_v22  ;;  %v2057_v30 = vadd.f32 %v2056_v28, %v2055_v26  ;;  %v2273_v25 = vld [vmem:[%s3099_s11] sm:$0x3f]  }
 0x105   :  { %v1000_v26 = vsel %vm871_vm3, %v2273_v25, 0 }
 0x106   :  { %v563_v31 = vadd.f32 %v2057_v30, %v522_v27  ;;  %v1917_v27 = vld [vmem:[%s3098_s10] ss:$0 sm:$0xff] }
 0x108   :  { %v641_v32 = vpop.f32.mrb[4].mxu1 }
 0x109   :  { %v2120_v33 = vpop.f32.mrb[5].mxu1 }
 0x10a   :  { %v644_v34 = vpop.f32.mrb[6].mxu1 }
 0x10b   :  { %v2121_v35 = vpop.f32.mrb[7].mxu1 }
 0x11e   :  { %v2074_v36 = vpop.f32.mrb[4].mxu0 }
 0x11f   :  { %v2075_v37 = vpop.f32.mrb[5].mxu0 }
 0x120   :  { %v2076_v38 = vadd.f32 %v2075_v37, %v2074_v36  ;;  %v2077_v39 = vpop.f32.mrb[6].mxu0  ;;  %v2274_v37 = vld [vmem:[%s3101_s13] sm:$0xff]  }
 0x121   :  { %v2078_v40 = vpop.f32.mrb[7].mxu0 }
 0x122   :  { %v601_v41 = vadd.f32 %v2076_v38, %v560_v29  ;;  %v2079_v42 = vadd.f32 %v2078_v40, %v2077_v39  ;;  %v2275_v38 = vld [vmem:[%s3101_s13 + $0x8] sm:$0xff]   ;;  %v2276_v39 = vld [vmem:[%s3101_s13 + $0x10] sm:$0xff]   ;;  %v2277_v40 = vld [vmem:[%s3101_s13 + $0x18] sm:$0xff]  }
 0x124   :  { %v642_v44 = vadd.f32 %v641_v32, %v601_v41  ;;  %v604_v45 = vadd.f32 %v2079_v42, %v563_v31  ;;  %v2278_v41 = vld [vmem:[%s3103_s15] ss:$28 sps:$4 sm:$0xff]  }
 0x125   :  { %v2280_v42 = vld [vmem:[%s3103_s15 + $0x4] ss:$28 sps:$4 sm:$0xff]  }
 0x126   :  { %v645_v46 = vadd.f32 %v644_v34, %v604_v45  ;;  %2358 = vtanh.f32 %v642_v44  ;;  %v2283_v44 = vld [vmem:[%s3103_s15 + $0xc] ss:$28 sps:$4 sm:$0xff]   ;;  %v2286_v45 = vld [vmem:[%s3103_s15 + $0x3c] ss:$28 sps:$4 sm:$0xff]  }
 0x128   :  { %2360 = vtanh.f32 %v645_v46  ;;  %v2284_v46 = vld [vmem:[%s3103_s15 + $0x38] ss:$28 sps:$4 sm:$0xff]  }
 0x130   :  { %v2359_v47 = vpop.eup %2358 }
 0x132   :  { %v2361_v48 = vpop.eup %2360 }
 0x133   :  { %v650_v49 = vpack.c.bf16 %v2361_v48, %v2359_v47  ;;  %v2292_v47 = vld [vmem:[%s3103_s15 + $0x74] ss:$28 sps:$4 sm:$0xff]  }
 0x134   :  { %v2290_v48 = vld [vmem:[%s3103_s15 + $0x70] ss:$28 sps:$4 sm:$0xff]  }
 0x135   :  { %2139 = vmatmul.mubr.bf16.vlgmr.msra.gmra.mrb[8].mxu1 %v650_v49  ;;  %v2298_v49 = vld [vmem:[%s3103_s15 + $0xac] ss:$28 sps:$4 sm:$0xff]  }
 0x136   :  { %2156 = vmatprep.mubr.msk.bf16.mxu1 %vm2463_vm0, %v2462_v43  ;;  %2155 = vmatpush3.bf16.msra.mxu1 %v873_v1  ;;  %v2293_v1 = vld [vmem:[%s3103_s15 + $0x78] ss:$28 sps:$4 sm:$0xff]  }
 0x137   :  { %2160 = vmatprep.subr.bf16.mxu1 %v2462_v43 }
 0x208   :  { %v756_v55 = vpop.f32.mrb[8].mxu1 }
 0x209   :  { %v757_v56 = vadd.f32 %v1899_v54, %v756_v55  ;;  %v2140_v57 = vpop.f32.mrb[9].mxu1 }
 0x20a   :  { %v759_v58 = vpop.f32.mrb[10].mxu1 }
 0x20b   :  { %v760_v59 = vadd.f32 %v1899_v54, %v759_v58  ;;  %v2141_v60 = vpop.f32.mrb[11].mxu1  ;;  %2362 = vtanh.f32 %v757_v56 }
 0x20c   :  { %v2281_v60 = vld [vmem:[%s3103_s15 + $0x8] ss:$28 sps:$4 sm:$0xff]  }
 0x20d   :  { %2364 = vtanh.f32 %v760_v59 }
 0x215   :  { %v2363_v61 = vpop.eup %2362 }
 0x217   :  { %v2365_v62 = vpop.eup %2364 }
 0x218   :  { %v765_v63 = vpack.c.bf16 %v2365_v62, %v2363_v61  ;;  %v2289_v62 = vld [vmem:[%s3103_s15 + $0x44] ss:$28 sps:$4 sm:$0xff]  }
 0x21a   :  { %2151 = vmatmul.mubr.msk.bf16.vlgmr.msra.gmra.mrb[8].mxu0 %vm805_vm2, %v765_v63  ;;  %v2287_v63 = vld [vmem:[%s3103_s15 + $0x40] ss:$28 sps:$4 sm:$0xff]  }
 0x21b   :  { %2180 = vmatprep.mubr.msk.bf16.mxu0 %vm2463_vm0, %v2462_v43  ;;  %2173 = vmatpush3.bf16.msra.mxu0 %v2274_v37  ;;  %v2336_v37 = vld [vmem:[%s3103_s15 + $0x84] ss:$28 sps:$4 sm:$0xff]  }
 0x21c   :  { %2174 = vmatprep.subr.bf16.mxu0 %v2462_v43 }
 0x21f   :  { %2175 = vmatpush3.bf16.msra.mxu0 %v2275_v38  ;;  %v2334_v38 = vld [vmem:[%s3103_s15 + $0x80] ss:$28 sps:$4 sm:$0xff]  }
 0x220   :  { %2176 = vmatprep.subr.bf16.mxu0 %v2462_v43 }
 0x223   :  { %2177 = vmatpush3.bf16.msra.mxu0 %v2276_v39  ;;  %v2337_v39 = vld [vmem:[%s3103_s15 + $0x88] ss:$28 sps:$4 sm:$0xff]  }
 0x224   :  { %2178 = vmatprep.subr.bf16.mxu0 %v2462_v43 }
 0x227   :  { %2179 = vmatpush3.bf16.msra.mxu0 %v2277_v40  ;;  %v2340_v40 = vld [vmem:[%s3103_s15 + $0xbc] ss:$28 sps:$4 sm:$0xff]  }
 0x228   :  { %1564 = vmatprep.subr.bf16.mxu0 %v2283_v44  ;;  %v2344_v44 = vld [vmem:[%s3103_s15 + $0xf4] ss:$28 sps:$4 sm:$0xff]  }
 0x2ed   :  { %v843_v3 = vpop.f32.mrb[8].mxu0 }
 0x2ee   :  { %v844_v4 = vadd.f32 %v1908_v2, %v843_v3  ;;  %v2152_v5 = vpop.f32.mrb[9].mxu0  ;;  %v2299_v3 = vld [vmem:[%s3103_s15 + $0xb0] ss:$28 sps:$4 sm:$0xff]  }
 0x2ef   :  { %v846_v6 = vpop.f32.mrb[10].mxu0  ;;  %v2307_v5 = vld [vmem:[%s3103_s15 + $0xec] ss:$28 sps:$4 sm:$0xff]  }
 0x2f0   :  { %v847_v7 = vadd.f32 %v1908_v2, %v846_v6  ;;  %v2153_v8 = vpop.f32.mrb[11].mxu0  ;;  %2366 = vtanh.f32 %v844_v4  ;;  %v2301_v2 = vld [vmem:[%s3103_s15 + $0xb4] ss:$28 sps:$4 sm:$0xff]   ;;  %v2304_v4 = vld [vmem:[%s3103_s15 + $0xe4] ss:$28 sps:$4 sm:$0xff]  }
 0x2f1   :  { %v2302_v6 = vld [vmem:[%s3103_s15 + $0xe0] ss:$28 sps:$4 sm:$0xff]  }
 0x2f2   :  { %2368 = vtanh.f32 %v847_v7  ;;  %v2305_v7 = vld [vmem:[%s3103_s15 + $0xe8] ss:$28 sps:$4 sm:$0xff]   ;;  %v2310_v8 = vld [vmem:[%s3103_s15 + $0x11c] ss:$28 sps:$4 sm:$0xff]  }
 0x2fa   :  { %v2367_v13 = vpop.eup %2366 }
 0x2fc   :  { %v2369_v14 = vpop.eup %2368 }
 0x2fd   :  { %v852_v16 = vpack.c.bf16 %v2369_v14, %v2367_v13  ;;  %v2319_v13 = vld [vmem:[%s3103_s15 + $0x15c] ss:$28 sps:$4 sm:$0xff]   ;;  %v2314_v14 = vld [vmem:[%s3103_s15 + $0x150] ss:$28 sps:$4 sm:$0xff]  }
 0x2ff   :  { %2157 = vmatmul.mubr.msk.bf16.vlgmr.msra.gmra.mrb[12].mxu1 %vm867_vm6, %v852_v16  ;;  %v2322_v16 = vld [vmem:[%s3103_s15 + $0x18c] ss:$28 sps:$4 sm:$0xff]  }
 0x300   :  { %2161 = vmatpush3.bf16.msra.mxu1 %v936_v15  ;;  %2162 = vmatprep.mubr.msk.bf16.mxu1 %vm2463_vm0, %v2462_v43  ;;  %v2317_v15 = vld [vmem:[%s3103_s15 + $0x158] ss:$28 sps:$4 sm:$0xff]  }
 0x301   :  { %2166 = vmatprep.subr.bf16.mxu1 %v2462_v43 }
 0x3d2   :  { %v909_v18 = vpop.f32.mrb[12].mxu1 }
 0x3d3   :  { %v910_v19 = vadd.f32 %v1914_v17, %v909_v18  ;;  %v2158_v20 = vpop.f32.mrb[13].mxu1  ;;  %v2465_v18 = vmov 0  }
 0x3d4   :  { %v912_v21 = vpop.f32.mrb[14].mxu1  ;;  %v2323_v20 = vld [vmem:[%s3103_s15 + $0x190] ss:$28 sps:$4 sm:$0xff]  }
 0x3d5   :  { %917 = vst.msk [vmem:[%s3105_s17] sm:$0xff] %vm916_vm7, %v910_v19  ;;  %v913_v22 = vadd.f32 %v1914_v17, %v912_v21  ;;  %v2159_v23 = vpop.f32.mrb[15].mxu1  ;;  %v2325_v17 = vld [vmem:[%s3103_s15 + $0x194] ss:$28 sps:$4 sm:$0xff]  }
 0x3d6   :  { %v2328_v21 = vld [vmem:[%s3103_s15 + $0x14] ss:$28 sps:$4 sm:$0xff]  }
 0x3d7   :  { %918 = vst.msk [vmem:[%s3105_s17 + $0x8] sm:$0xff] %vm916_vm7, %v913_v22  ;;  %v919_v24 = vpack.c.bf16 %v913_v22, %v910_v19  ;;  %v2320_v19 = vld [vmem:[%s3103_s15 + $0x188] ss:$28 sps:$4 sm:$0xff]   ;;  %v1922_v22 = vld [vmem:[%s3102_s14] ss:$0 sm:$0xff] }
 0x3d9   :  { %2163 = vmatmul.mubr.msk.bf16.vlgmr.msra.gmra.mrb[16].mxu1 %vm916_vm7, %v919_v24 }
 0x3da   :  { %2168 = vmatprep.mubr.msk.bf16.mxu1 %vm2463_vm0, %v2462_v43  ;;  %2167 = vmatpush3.bf16.msra.mxu1 %v1000_v26 }
 0x3db   :  { %1521 = vmatprep.subr.bf16.mxu1 %v2280_v42  ;;  %v2341_v42 = vld [vmem:[%s3103_s15 + $0xc0] ss:$28 sps:$4 sm:$0xff]  }
 0x4ac   :  { %v972_v28 = vpop.f32.mrb[16].mxu1 }
 0x4ad   :  { %v973_v29 = vadd.f32 %v1917_v27, %v972_v28  ;;  %v2164_v30 = vpop.f32.mrb[17].mxu1 }
 0x4ae   :  { %v975_v31 = vpop.f32.mrb[18].mxu1 }
 0x4af   :  { %v976_v32 = vadd.f32 %v1917_v27, %v975_v31  ;;  %v2165_v33 = vpop.f32.mrb[19].mxu1  ;;  %2370 = vtanh.f32 %v973_v29  ;;  %v2326_v31 = vld [vmem:[%s3103_s15 + $0x10] ss:$28 sps:$4 sm:$0xff]  }
 0x4b1   :  { %2372 = vtanh.f32 %v976_v32  ;;  %v2329_v32 = vld [vmem:[%s3103_s15 + $0x18] ss:$28 sps:$4 sm:$0xff]  }
 0x4b9   :  { %v2371_v34 = vpop.eup %2370 }
 0x4bb   :  { %v2373_v35 = vpop.eup %2372 }
 0x4bc   :  { %v981_v36 = vpack.c.bf16 %v2373_v35, %v2371_v34  ;;  %v2332_v34 = vld [vmem:[%s3103_s15 + $0x4c] ss:$28 sps:$4 sm:$0xff]  }
 0x4bd   :  { %v2330_v35 = vld [vmem:[%s3103_s15 + $0x48] ss:$28 sps:$4 sm:$0xff]  }
 0x4be   :  { %2169 = vmatmul.mubr.msk.bf16.vlgmr.msra.gmra.mrb[20].mxu1 %vm867_vm6, %v981_v36  ;;  %v2333_v36 = vld [vmem:[%s3103_s15 + $0x50] ss:$28 sps:$4 sm:$0xff]  }
 0x4bf   :  { %1522 = vmatpush1.bf16.msra.mxu1 %v2278_v41  ;;  %1553 = vmatprep.mubr.bf16.mxu1 %v2465_v18  ;;  %v2338_v41 = vld [vmem:[%s3103_s15 + $0xb8] ss:$28 sps:$4 sm:$0xff]  }
 0x4c0   :  { %1523 = vmatprep.subr.bf16.mxu1 %v2286_v45  ;;  %v2342_v45 = vld [vmem:[%s3103_s15 + $0xf0] ss:$28 sps:$4 sm:$0xff]  }
 0x4c3   :  { %1524 = vmatpush1.bf16.msra.mxu1 %v2284_v46  ;;  %v2345_v46 = vld [vmem:[%s3103_s15 + $0xf8] ss:$28 sps:$4 sm:$0xff]  }
 0x4c4   :  { %1525 = vmatprep.subr.bf16.mxu1 %v2292_v47  ;;  %v2348_v47 = vld [vmem:[%s3103_s15 + $0x12c] ss:$28 sps:$4 sm:$0xff]  }
 0x4c7   :  { %1526 = vmatpush1.bf16.msra.mxu1 %v2290_v48  ;;  %v2346_v48 = vld [vmem:[%s3103_s15 + $0x128] ss:$28 sps:$4 sm:$0xff]  }
 0x4c8   :  { %1527 = vmatprep.subr.bf16.mxu1 %v2298_v49  ;;  %v2349_v49 = vld [vmem:[%s3103_s15 + $0x130] ss:$28 sps:$4 sm:$0xff]  }
 0x4cb   :  { %1528 = vmatpush1.bf16.msra.mxu1 %v2296_v50  ;;  %v2352_v50 = vld [vmem:[%s3103_s15 + $0x164] ss:$28 sps:$4 sm:$0xff]  }
 0x4cc   :  { %1529 = vmatprep.subr.bf16.mxu1 %v2304_v4 }
 0x4cf   :  { %1530 = vmatpush1.bf16.msra.mxu1 %v2302_v6 }
 0x4d0   :  { %1531 = vmatprep.subr.bf16.mxu1 %v2310_v8 }
 0x4d3   :  { %1532 = vmatpush1.bf16.msra.mxu1 %v2308_v10 }
 0x4d4   :  { %1533 = vmatprep.subr.bf16.mxu1 %v2316_v12 }
 0x4d7   :  { %1534 = vmatpush1.bf16.msra.mxu1 %v2314_v14 }
 0x4d8   :  { %1535 = vmatprep.subr.bf16.mxu1 %v2322_v16 }
 0x4db   :  { %1536 = vmatpush1.bf16.msra.mxu1 %v2320_v19 }
 0x4dc   :  { %1607 = vmatprep.subr.bf16.mxu1 %v2328_v21 }
 0x591   :  { %v1036_v52 = vpop.f32.mrb[20].mxu1 }
 0x592   :  { %v1037_v53 = vadd.f32 %v1919_v51, %v1036_v52  ;;  %v2170_v54 = vpop.f32.mrb[21].mxu1  ;;  %v2353_v52 = vld [vmem:[%s3103_s15 + $0x168] ss:$28 sps:$4 sm:$0xff]  }
 0x593   :  { %v1039_v55 = vpop.f32.mrb[22].mxu1  ;;  %v2354_v54 = vld [vmem:[%s3103_s15 + $0x198] ss:$28 sps:$4 sm:$0xff]  }
 0x594   :  { %v1040_v56 = vadd.f32 %v1919_v51, %v1039_v55  ;;  %v2171_v57 = vpop.f32.mrb[23].mxu1  ;;  %2374 = vtanh.f32 %v1037_v53  ;;  %v2350_v51 = vld [vmem:[%s3103_s15 + $0x160] ss:$28 sps:$4 sm:$0xff]  }
 0x595   :  { %v2356_v53 = vld [vmem:[%s3103_s15 + $0x19c] ss:$28 sps:$4 sm:$0xff]  }
 0x596   :  { %2376 = vtanh.f32 %v1040_v56  ;;  %v2357_v55 = vld [vmem:[%s3103_s15 + $0x1a0] ss:$28 sps:$4 sm:$0xff]   ;;  %v1198_v56 = vlaneseq  ;;  %s2466_s15 = smov [#allocation2]  }
 0x598   :  { %v3055_v57 = vshrl.u32 %v1198_v56, 7 }
 0x59e   :  { %v2375_v58 = vpop.eup %2374 }
 0x5a0   :  { %v2377_v59 = vpop.eup %2376 }
 0x5a1   :  { %v1045_v61 = vpack.c.bf16 %v2377_v59, %v2375_v58  ;;  %v1200_v58 = vsub.s32 0, %v3055_v57  ;;  %v1208_v59 = vsub.s32 2, %v3055_v57 }
 0x5a3   :  { %2181 = vmatmul.mubr.msk.bf16.vlgmr.msra.gmra.mrb[12].mxu0 %vm805_vm2, %v1045_v61  ;;  %v1204_v61 = vsub.s32 1, %v3055_v57 }
 0x5a4   :  { %1565 = vmatpush1.bf16.msra.mxu0 %v2281_v60  ;;  %1596 = vmatprep.mubr.bf16.mxu0 %v2465_v18  ;;  %v3062_v60 = vld [vmem:[%s3104_s16] sm:$0x7f]  ;;  %s1835_s16 = sshll.u32 %s2466_s15, 4  ;;  %s1836_s16 = int_to_ptr.vmem [resolvable:$true] %s1835_s16 }
 0x5a5   :  { %1566 = vmatprep.subr.bf16.mxu0 %v2289_v62  ;;  %v1201_v62 = vrot.slane %v3062_v60, %v1200_v58  ;;  %s2438_s13 = scalar_lea.vmem %s1836_s16, 896  ;;  %p2443_p1 = scmp.lt.s32.totalorder %s1836_s16, %s1836_s16 }
 0x5a6   :  { %p2439_p0 = scmp.ne.s32.totalorder %s1836_s16, %s2438_s13  ;;  %p2444_p2 = scmp.lt.s32.totalorder %s2438_s13, %s2438_s13 }
 0x5a8   :  { %1567 = vmatpush1.bf16.msra.mxu0 %v2287_v63  ;;  %v1209_v63 = vrot.slane %v3062_v60, %v1208_v59  ;;  %p2445_p3 = por %p2444_p2, %p2443_p1 }
 0x5a9   :  { %1568 = vmatprep.subr.bf16.mxu0 %v2295_v0  ;;  %v1205_v0 = vrot.slane %v3062_v60, %v1204_v61 }
 0x5aa   :  { %p2446_p4 = pnand %p2445_p3, %p2439_p0 }
 0x5ac   :  { %1569 = vmatpush1.bf16.msra.mxu0 %v2293_v1 }
 0x5ad   :  { %1570 = vmatprep.subr.bf16.mxu0 %v2301_v2 }
 0x5b0   :  { %1571 = vmatpush1.bf16.msra.mxu0 %v2299_v3 }
 0x5b1   :  { %1572 = vmatprep.subr.bf16.mxu0 %v2307_v5 }
 0x5b4   :  { %1573 = vmatpush1.bf16.msra.mxu0 %v2305_v7 }
 0x5b5   :  { %1574 = vmatprep.subr.bf16.mxu0 %v2313_v9 }
 0x5b8   :  { %1575 = vmatpush1.bf16.msra.mxu0 %v2311_v11 }
 0x5b9   :  { %1576 = vmatprep.subr.bf16.mxu0 %v2319_v13 }
 0x5bc   :  { %1577 = vmatpush1.bf16.msra.mxu0 %v2317_v15 }
 0x5bd   :  { %1578 = vmatprep.subr.bf16.mxu0 %v2325_v17 }
 0x5c0   :  { %1579 = vmatpush1.bf16.msra.mxu0 %v2323_v20 }
 0x5c1   :  { %2184 = vmatprep.subr.bf16.mxu0 %v2462_v43 }
 0x676   :  { %v1122_v23 = vpop.f32.mrb[12].mxu0 }
 0x677   :  { %v1123_v24 = vadd.f32 %v1922_v22, %v1122_v23  ;;  %v2182_v25 = vpop.f32.mrb[13].mxu0 }
 0x678   :  { %v1125_v26 = vpop.f32.mrb[14].mxu0 }
 0x679   :  { %v1126_v27 = vadd.f32 %v1922_v22, %v1125_v26  ;;  %v2183_v28 = vpop.f32.mrb[15].mxu0  ;;  %2378 = vtanh.f32 %v1123_v24 }
 0x67b   :  { %2380 = vtanh.f32 %v1126_v27 }
 0x683   :  { %v2379_v29 = vpop.eup %2378 }
 0x685   :  { %v2381_v30 = vpop.eup %2380 }
 0x686   :  { %v1131_v33 = vpack.c.bf16 %v2381_v30, %v2379_v29 }
 0x688   :  { %1554 = vmatmul.mubr.bf16.vlgmr.msra.gmra.mrb[24].mxu1 %v1131_v33  ;;  %1597 = vmatmul.mubr.bf16.vlgmr.msra.gmra.mrb[16].mxu0 %v1131_v33 }
 0x689   :  { %1608 = vmatpush1.bf16.msra.mxu1 %v2326_v31  ;;  %2185 = vmatpush3.bf16.msra.mxu0 %v2329_v32 }
 0x68a   :  { %1609 = vmatprep.subr.bf16.mxu1 %v2332_v34  ;;  %2186 = vmatprep.subr.bf16.mxu0 %v2462_v43 }
 0x68b   :  { %1639 = vmatprep.mubr.bf16.mxu1 %v2465_v18  ;;  %2200 = vmatprep.mubr.msk.bf16.mxu0 %vm2463_vm0, %v2462_v43 }
 0x68d   :  { %1610 = vmatpush1.bf16.msra.mxu1 %v2330_v35  ;;  %2187 = vmatpush3.bf16.msra.mxu0 %v2333_v36 }
 0x68e   :  { %1611 = vmatprep.subr.bf16.mxu1 %v2336_v37  ;;  %2188 = vmatprep.subr.bf16.mxu0 %v2462_v43 }
 0x691   :  { %1612 = vmatpush1.bf16.msra.mxu1 %v2334_v38  ;;  %2189 = vmatpush3.bf16.msra.mxu0 %v2337_v39 }
 0x692   :  { %1613 = vmatprep.subr.bf16.mxu1 %v2340_v40  ;;  %2190 = vmatprep.subr.bf16.mxu0 %v2462_v43 }
 0x695   :  { %1614 = vmatpush1.bf16.msra.mxu1 %v2338_v41  ;;  %2191 = vmatpush3.bf16.msra.mxu0 %v2341_v42  ;;  %v1216_v42 = vsub.s32 4, %v3055_v57 }
 0x696   :  { %1615 = vmatprep.subr.bf16.mxu1 %v2344_v44  ;;  %2192 = vmatprep.subr.bf16.mxu0 %v2462_v43  ;;  %v1224_v44 = vsub.s32 6, %v3055_v57 }
 0x699   :  { %1616 = vmatpush1.bf16.msra.mxu1 %v2342_v45  ;;  %2193 = vmatpush3.bf16.msra.mxu0 %v2345_v46  ;;  %v1220_v45 = vsub.s32 5, %v3055_v57 }
 0x69a   :  { %1617 = vmatprep.subr.bf16.mxu1 %v2348_v47  ;;  %2194 = vmatprep.subr.bf16.mxu0 %v2462_v43 }
 0x69d   :  { %1618 = vmatpush1.bf16.msra.mxu1 %v2346_v48  ;;  %2195 = vmatpush3.bf16.msra.mxu0 %v2349_v49  ;;  %v1217_v48 = vrot.slane %v3062_v60, %v1216_v42  ;;  %v1225_v49 = vrot.slane %v3062_v60, %v1224_v44 }
 0x69e   :  { %1619 = vmatprep.subr.bf16.mxu1 %v2352_v50  ;;  %2196 = vmatprep.subr.bf16.mxu0 %v2462_v43 }
 0x6a1   :  { %1620 = vmatpush1.bf16.msra.mxu1 %v2350_v51  ;;  %2197 = vmatpush3.bf16.msra.mxu0 %v2353_v52  ;;  %v1221_v51 = vrot.slane %v3062_v60, %v1220_v45 }
 0x6a2   :  { %1621 = vmatprep.subr.bf16.mxu1 %v2356_v53  ;;  %2198 = vmatprep.subr.bf16.mxu0 %v2462_v43  ;;  %v1212_v43 = vsub.s32 3, %v3055_v57 }
 0x6a4   :  { %v1213_v1 = vrot.slane %v3062_v60, %v1212_v43 }
 0x6a5   :  { %1622 = vmatpush1.bf16.msra.mxu1 %v2354_v54  ;;  %2199 = vmatpush3.bf16.msra.mxu0 %v2357_v55 }
 0x6a8   :  { %1640 = vmatmul.mubr.bf16.vlgmr.msra.gmra.mrb[28].mxu1 %v1131_v33  ;;  %2201 = vmatmul.mubr.bf16.vlgmr.msra.gmra.mrb[20].mxu0 %v1131_v33 }
 0x75b   :  { %v1555_v2 = vpop.f32.mrb[24].mxu1  ;;  %v1598_v3 = vpop.f32.mrb[16].mxu0 }
 0x75c   :  { %v1556_v4 = vadd.f32 %v1555_v2, %v1201_v62  ;;  %v1599_v5 = vadd.f32 %v1598_v3, %v1209_v63  ;;  %v1557_v6 = vpop.f32.mrb[25].mxu1  ;;  %v1600_v7 = vpop.f32.mrb[17].mxu0 }
 0x75d   :  { %v1558_v8 = vadd.f32 %v1557_v6, %v1205_v0  ;;  %v1601_v9 = vadd.f32 %v1600_v7, %v1213_v1  ;;  %v1559_v10 = vpop.f32.mrb[26].mxu1  ;;  %v1602_v11 = vpop.f32.mrb[18].mxu0 }
 0x75e   :  { %v1984_v12 = vmul.f32 -1.442695, %v1556_v4  ;;  %v1986_v13 = vmul.f32 -1.442695, %v1599_v5  ;;  %v1560_v14 = vadd.f32 %v1559_v10, %v1201_v62  ;;  %v1603_v15 = vadd.f32 %v1602_v11, %v1209_v63  ;;  %v1561_v16 = vpop.f32.mrb[27].mxu1  ;;  %v1604_v17 = vpop.f32.mrb[19].mxu0 }
 0x75f   :  { %v1985_v18 = vmul.f32 -1.442695, %v1558_v8  ;;  %v1987_v19 = vmul.f32 -1.442695, %v1601_v9  ;;  %v1562_v20 = vadd.f32 %v1561_v16, %v1205_v0  ;;  %v1605_v21 = vadd.f32 %v1604_v17, %v1213_v1 }
 0x760   :  { %2382 = vpow2.f32 %v1984_v12  ;;  %v1991_v22 = vmul.f32 -1.442695, %v1560_v14  ;;  %v1993_v23 = vmul.f32 -1.442695, %v1603_v15 }
 0x761   :  { %2384 = vpow2.f32 %v1986_v13  ;;  %v1992_v24 = vmul.f32 -1.442695, %v1562_v20  ;;  %v1994_v25 = vmul.f32 -1.442695, %v1605_v21 }
 0x762   :  { %2386 = vpow2.f32 %v1985_v18 }
 0x763   :  { %2388 = vpow2.f32 %v1987_v19 }
 0x764   :  { %2390 = vpow2.f32 %v1991_v22 }
 0x765   :  { %2392 = vpow2.f32 %v1993_v23 }
 0x766   :  { %2394 = vpow2.f32 %v1992_v24 }
 0x767   :  { %2396 = vpow2.f32 %v1994_v25 }
 0x76a   :  { %v2383_v26 = vpop.eup %2382 }
 0x76b   :  { %v2385_v27 = vpop.eup %2384  ;;  %v1733_v28 = vadd.f32 1.0, %v2383_v26 }
 0x76c   :  { %v2387_v29 = vpop.eup %2386  ;;  %v1735_v30 = vadd.f32 1.0, %v2385_v27 }
 0x76d   :  { %v2389_v31 = vpop.eup %2388  ;;  %2398 = vrcp.f32 %v1733_v28  ;;  %v1734_v32 = vadd.f32 1.0, %v2387_v29 }
 0x76e   :  { %v2391_v33 = vpop.eup %2390  ;;  %2400 = vrcp.f32 %v1735_v30  ;;  %v1736_v34 = vadd.f32 1.0, %v2389_v31 }
 0x76f   :  { %v2393_v35 = vpop.eup %2392  ;;  %2402 = vrcp.f32 %v1734_v32  ;;  %v1740_v36 = vadd.f32 1.0, %v2391_v33 }
 0x770   :  { %v2395_v37 = vpop.eup %2394  ;;  %2404 = vrcp.f32 %v1736_v34  ;;  %v1742_v38 = vadd.f32 1.0, %v2393_v35 }
 0x771   :  { %v2397_v39 = vpop.eup %2396  ;;  %2406 = vrcp.f32 %v1740_v36  ;;  %v1741_v40 = vadd.f32 1.0, %v2395_v37 }
 0x772   :  { %2408 = vrcp.f32 %v1742_v38  ;;  %v1743_v41 = vadd.f32 1.0, %v2397_v39 }
 0x773   :  { %2410 = vrcp.f32 %v1741_v40 }
 0x774   :  { %2412 = vrcp.f32 %v1743_v41 }
 0x777   :  { %v2399_v46 = vpop.eup %2398 }
 0x778   :  { %v2401_v47 = vpop.eup %2400 }
 0x779   :  { %v2403_v50 = vpop.eup %2402 }
 0x77a   :  { %v2405_v52 = vpop.eup %2404  ;;  %v2006_v53 = vpack.c.bf16 %v2403_v50, %v2399_v46 }
 0x77b   :  { %v2407_v54 = vpop.eup %2406  ;;  %v2007_v55 = vpack.c.bf16 %v2405_v52, %v2401_v47  ;;  %v1641_v56 = vpop.f32.mrb[28].mxu1 }
 0x77c   :  { %v1684_v58 = vpop.f32.mrb[20].mxu0  ;;  %v2409_v59 = vpop.eup %2408  ;;  %1819 = vst [vmem:[#allocation2] sm:$0xff] %v2006_v53  ;;  %v1642_v61 = vadd.f32 %v1641_v56, %v1217_v48 }
 0x77d   :  { %v1685_v43 = vadd.f32 %v1684_v58, %v1225_v49  ;;  %v1643_v57 = vpop.f32.mrb[29].mxu1  ;;  %v2202_v62 = vpop.f32.mrb[21].mxu0  ;;  %1820 = vst [vmem:[#allocation2 + $0x8] sm:$0xff] %v2007_v55 }
 0x77e   :  { %v2411_v63 = vpop.eup %2410  ;;  %v1644_v0 = vadd.f32 %v1643_v57, %v1221_v51  ;;  %v1645_v1 = vpop.f32.mrb[30].mxu1  ;;  %v1988_v60 = vmul.f32 -1.442695, %v1642_v61 }
 0x77f   :  { %v1687_v2 = vpop.f32.mrb[22].mxu0  ;;  %v2413_v3 = vpop.eup %2412  ;;  %v2010_v4 = vpack.c.bf16 %v2411_v63, %v2407_v54  ;;  %v1990_v5 = vmul.f32 -1.442695, %v1685_v43  ;;  %v1646_v6 = vadd.f32 %v1645_v1, %v1217_v48 }
 0x780   :  { %v1647_v7 = vpop.f32.mrb[31].mxu1  ;;  %v2203_v8 = vpop.f32.mrb[23].mxu0  ;;  %v2011_v9 = vpack.c.bf16 %v2413_v3, %v2409_v59  ;;  %v1989_v10 = vmul.f32 -1.442695, %v1644_v0  ;;  %v1688_v11 = vadd.f32 %v1687_v2, %v1225_v49  ;;  %2414 = vpow2.f32 %v1988_v60 }
 0x781   :  { %v1648_v12 = vadd.f32 %v1647_v7, %v1221_v51  ;;  %1824 = vst [vmem:[#allocation2 + $0x1c] sm:$0xff] %v2010_v4  ;;  %v1995_v13 = vmul.f32 -1.442695, %v1646_v6  ;;  %2416 = vpow2.f32 %v1990_v5 }
 0x782   :  { %1825 = vst [vmem:[#allocation2 + $0x24] sm:$0xff] %v2011_v9  ;;  %v1997_v14 = vmul.f32 -1.442695, %v1688_v11  ;;  %2418 = vpow2.f32 %v1989_v10 }
 0x783   :  { %v1996_v15 = vmul.f32 -1.442695, %v1648_v12  ;;  %2420 = vpow2.f32 %v1995_v13 }
 0x784   :  { %2422 = vpow2.f32 %v1997_v14 }
 0x785   :  { %2424 = vpow2.f32 %v1996_v15 }
 0x78a   :  { %v2415_v16 = vpop.eup %2414 }
 0x78b   :  { %v2417_v17 = vpop.eup %2416  ;;  %v1737_v18 = vadd.f32 1.0, %v2415_v16 }
 0x78c   :  { %v2419_v19 = vpop.eup %2418  ;;  %v1739_v20 = vadd.f32 1.0, %v2417_v17 }
 0x78d   :  { %v2421_v21 = vpop.eup %2420  ;;  %2426 = vrcp.f32 %v1737_v18  ;;  %v1738_v22 = vadd.f32 1.0, %v2419_v19 }
 0x78e   :  { %v2423_v23 = vpop.eup %2422  ;;  %2428 = vrcp.f32 %v1739_v20  ;;  %v1744_v24 = vadd.f32 1.0, %v2421_v21 }
 0x78f   :  { %v2425_v25 = vpop.eup %2424  ;;  %2430 = vrcp.f32 %v1738_v22  ;;  %v1746_v26 = vadd.f32 1.0, %v2423_v23 }
 0x790   :  { %2432 = vrcp.f32 %v1744_v24  ;;  %v1745_v27 = vadd.f32 1.0, %v2425_v25 }
 0x791   :  { %2434 = vrcp.f32 %v1746_v26 }
 0x792   :  { %2436 = vrcp.f32 %v1745_v27 }
 0x797   :  { %v2427_v28 = vpop.eup %2426 }
 0x798   :  { %v2429_v29 = vpop.eup %2428 }
 0x799   :  { %v2431_v30 = vpop.eup %2430  ;;  %v2009_v31 = vpack.c.bf16 %v2429_v29, %v2429_v29 }
 0x79a   :  { %v2433_v32 = vpop.eup %2432  ;;  %v2008_v33 = vpack.c.bf16 %v2431_v30, %v2427_v28 }
 0x79b   :  { %v2435_v34 = vpop.eup %2434  ;;  %1823 = vst.msk [vmem:[#allocation2 + $0x18] sm:$0xf] %vm1822_vm8, %v2009_v31 }
 0x79c   :  { %v2437_v35 = vpop.eup %2436  ;;  %1821 = vst [vmem:[#allocation2 + $0x10] sm:$0xff] %v2008_v33  ;;  %v2013_v36 = vpack.c.bf16 %v2435_v34, %v2435_v34 }
 0x79d   :  { %v2012_v37 = vpack.c.bf16 %v2437_v35, %v2433_v32 }
 0x79e   :  { %1827 = vst.msk [vmem:[#allocation2 + $0x34] sm:$0xf] %vm1822_vm8, %v2013_v36 }
 0x79f   :  { %1826 = vst [vmem:[#allocation2 + $0x2c] sm:$0xff] %v2012_v37 }
 0x7a0   :  { %2449 = shalt.err (!%p2446_p4)
}
 0x7a1   :  { %s2450_s20 = scalar_lea.hbm %s3106_s18, 896 }
 0x7a2   :  { %p2451_p5 = scmp.ne.s32.totalorder %s3106_s18, %s2450_s20  ;;  %p2454_p6 = scmp.lt.u32.totalorder %s2450_s20, %s3106_s18 }
 0x7a4   :  { %p2456_p7 = pnand %p2454_p6, %p2451_p5 }
 0x7a6   :  { %2459 = shalt.err (!%p2456_p7)
}
 0x7a7   :  { %s2467_s2 = smov 448   ;;  %s2468_s23 = smov 28  }
 0x7a8   :  { %1841 = dma.vmem_to_hbm [thread:$0]  %s1836_s16, 896, %s3106_s18, [#allocation3], %s2467_s2, %s2467_s2, %s2468_s23  }
 0x7a9   :  { %2460 = dma.done.wait [#allocation3], 896  }
 0x7aa   :  { %2461 = vsyncadd [#allocation3], 4294966400 }
 0x7ab   :  { %1847 = vsyncpa [#allocation3], 1 }

</bundles_post_ra>
